<compile_context>
chip_gen: v7x
topology: tpu7x:2x2x1
jax: 0.10.0
libtpu: 0.0.40
codegen_flags: <defaults>
</compile_context>

<pallas_src>
import functools

import jax
import jax.numpy as jnp
from jax.experimental import pallas as pl
from jax.experimental.pallas import tpu as pltpu


def _round_up(x, m):
    return ((x + m - 1) // m) * m


# ---------------------------------------------------------------------------
# Kernels
# ---------------------------------------------------------------------------

def _cls_kernel_wide_s(x_ref, w_ref, b_ref, o_ref):
    """logits = x @ W + b ; lane-dense [tile_b, s_pad] log-softmax store."""
    logits = (
        jnp.dot(x_ref[...], w_ref[...], preferred_element_type=jnp.float32)
        + b_ref[...]
    )
    # Numerically stable log_softmax over the (padded) speaker axis. Padded
    # columns carry bias -1e30 -> exp underflows to 0, real columns unaffected.
    m = jnp.max(logits, axis=-1, keepdims=True)
    shifted = logits - m
    lse = jnp.log(jnp.sum(jnp.exp(shifted), axis=-1, keepdims=True))
    o_ref[...] = (shifted - lse).astype(o_ref.dtype)


def _cls_kernel_small_s(x_ref, wt_ref, bt_ref, o_ref, *, s_sub):
    """Same math with the batch on lanes: logits_t[s, b] = sum_d W^T[s,d]*x[b,d].

    The store writes only `s_sub` (= spk_num rounded up to 8) sublane rows, so
    no padded-lane HBM write traffic when spk_num << 128.
    """
    # A @ B^T on the MXU: (s_pad, D) x (tile_b, D) -> (s_pad, tile_b).
    logits_t = jax.lax.dot_general(
        wt_ref[...], x_ref[...],
        dimension_numbers=(((1,), (1,)), ((), ())),
        preferred_element_type=jnp.float32,
    ) + bt_ref[...]
    # log_softmax over the speaker axis (sublanes); each lane = one batch row.
    m = jnp.max(logits_t, axis=0, keepdims=True)
    shifted = logits_t - m
    lse = jnp.log(jnp.sum(jnp.exp(shifted), axis=0, keepdims=True))
    o_ref[...] = (shifted - lse)[:s_sub, :].astype(o_ref.dtype)


# ---------------------------------------------------------------------------
# Parameter fusion (do ONCE per weight set, outside the hot path)
# ---------------------------------------------------------------------------

def fuse_cls_params(w1, b1, w2, b2):
    """Fold Linear->Linear into one affine map and pick the kernel layout.

    logits = (x @ w1 + b1) @ w2 + b2 = x @ (w1 @ w2) + (b1 @ w2 + b2)
    The speaker axis is padded to a multiple of 128 lanes for the in-VMEM
    compute; padded weight columns are 0 and padded bias entries are -1e30 so
    they vanish from the softmax.
    """
    S = w2.shape[1]
    w = jnp.dot(w1, w2, preferred_element_type=jnp.float32)        # [D, S]
    b = jnp.dot(b1, w2, preferred_element_type=jnp.float32) + b2   # [1, S]
    s_pad = _round_up(S, 128)
    if s_pad != S:
        w = jnp.pad(w, ((0, 0), (0, s_pad - S)))                     # zeros
        b = jnp.pad(b, ((0, 0), (0, s_pad - S)), constant_values=-1e30)
    transposed = S < 128          # padded lanes would dominate the store
    if transposed:
        w = w.T                   # [s_pad, D]
        b = b.T                   # [s_pad, 1]
    return {"w": w, "b": b, "spk_num": S, "transposed": transposed}


# ---------------------------------------------------------------------------
# Forward
# ---------------------------------------------------------------------------

_VMEM_BUDGET_BYTES = 28 * 1024 * 1024   # safe across v5e / v6e / v7x


def cls_apply(x, params):
    """Run the fused-classifier kernel. `params` comes from fuse_cls_params."""
    w, b = params["w"], params["b"]
    S, transposed = params["spk_num"], params["transposed"]
    B, D = x.shape
    s_pad = w.shape[0] if transposed else w.shape[1]

    d_lane = _round_up(D, 128)
    # Conservative VMEM accounting: assume every operand is double-buffered,
    # including the grid-constant fused weight / bias blocks.
    fixed_bytes = 8 * (s_pad * d_lane + 8 * s_pad) + (2 << 20)
    per_row_bytes = 4 * (2 * d_lane + 4 * s_pad)   # x tile + out tile + temps
    tb_budget = max(8, ((_VMEM_BUDGET_BYTES - fixed_bytes) // per_row_bytes)
                    // 8 * 8)

    if transposed:
        # ---- small-S path: output [s_sub, B], batch on (dense) lanes ----
        s_sub = _round_up(S, 8)
        if B <= 128:
            tb = B                                    # single batch tile
        else:
            # Out-block lane dim must be a multiple of 128; keep >=2 grid
            # steps so both v7x TensorCores get work.
            tb = min(max(128, (tb_budget // 128) * 128), 1024,
                     _round_up(pl.cdiv(B, 2), 128))
        grid = (pl.cdiv(B, tb),)
        vmem_limit = int(min(max(fixed_bytes + tb * per_row_bytes + (8 << 20),
                                 24 << 20), 64 << 20))
        cost = pl.CostEstimate(
            flops=2 * B * D * s_pad,
            transcendentals=B * s_pad,
            bytes_accessed=4 * (B * D + s_pad * D + s_pad + s_sub * B),
        )
        kernel = functools.partial(_cls_kernel_small_s, s_sub=s_sub)
        out_t = pl.pallas_call(
            kernel,
            out_shape=jax.ShapeDtypeStruct((s_sub, B), jnp.float32),
            grid=grid,
            in_specs=[
                pl.BlockSpec((tb, D), lambda i: (i, 0)),      # x tile, pipelined
                pl.BlockSpec((s_pad, D), lambda i: (0, 0)),   # fused W^T, resident
                pl.BlockSpec((s_pad, 1), lambda i: (0, 0)),   # fused b^T, resident
            ],
            out_specs=pl.BlockSpec((s_sub, tb), lambda i: (0, i)),
            compiler_params=pltpu.CompilerParams(
                dimension_semantics=("parallel",),
                vmem_limit_bytes=vmem_limit,
            ),
            cost_estimate=cost,
        )(x, w, b)
        out_t = out_t if s_sub == S else out_t[:S, :]
        return out_t.T                                        # [B, S]

    # ---- S >= 128 path: lane-dense [tile_b, s_pad] store ----
    if B <= 8:
        tb = B
    else:
        tb = min(tb_budget, 1024, _round_up(pl.cdiv(B, 2), 8), _round_up(B, 8))
        tb = max(8, (tb // 8) * 8)
    grid = (pl.cdiv(B, tb),)
    vmem_limit = int(min(max(fixed_bytes + tb * per_row_bytes + (8 << 20),
                             24 << 20), 64 << 20))
    cost = pl.CostEstimate(
        flops=2 * B * D * s_pad,
        transcendentals=B * s_pad,
        bytes_accessed=4 * (B * D + D * s_pad + s_pad + B * s_pad),
    )
    out = pl.pallas_call(
        _cls_kernel_wide_s,
        out_shape=jax.ShapeDtypeStruct((B, s_pad), jnp.float32),
        grid=grid,
        in_specs=[
            pl.BlockSpec((tb, D), lambda i: (i, 0)),       # x tile, pipelined
            pl.BlockSpec((D, s_pad), lambda i: (0, 0)),    # fused W, resident
            pl.BlockSpec((1, s_pad), lambda i: (0, 0)),    # fused b, resident
        ],
        out_specs=pl.BlockSpec((tb, s_pad), lambda i: (i, 0)),
        compiler_params=pltpu.CompilerParams(
            dimension_semantics=("parallel",),
            vmem_limit_bytes=vmem_limit,
        ),
        cost_estimate=cost,
    )(x, w, b)
    return out if s_pad == S else out[:, :S]


def cls_forward(x, w1, b1, w2, b2):
    """One-shot convenience wrapper (re-fuses the weights every call; for
    repeated inference call fuse_cls_params once and reuse the result)."""
    return cls_apply(x, fuse_cls_params(w1, b1, w2, b2))


def _reference(x, w1, b1, w2, b2):
    h = x @ w1 + b1
    logits = h @ w2 + b2
    return jax.nn.log_softmax(logits, axis=-1)


if __name__ == "__main__":
    root = jax.random.PRNGKey(0)

    def make_case(key, B, D, S):
        kx, k1, k2, k3, k4 = jax.random.split(key, 5)
        x = jax.random.normal(kx, (B, D), dtype=jnp.float32)
        w1 = jax.random.normal(k1, (D, D), dtype=jnp.float32) * 0.1
        b1 = jax.random.normal(k2, (1, D), dtype=jnp.float32) * 0.1
        w2 = jax.random.normal(k3, (D, S), dtype=jnp.float32) * 0.1
        b2 = jax.random.normal(k4, (1, S), dtype=jnp.float32) * 0.1
        return x, w1, b1, w2, b2

    cases = [
        (8, 32, 16),    # module-sized demo: small-S transposed-store path
        (200, 32, 16),  # small-S path, 2 batch tiles, ragged last tile
        (24, 64, 256),  # S >= 128 lane-dense path, 2 batch tiles, ragged
    ]
    for idx, (B, D, S) in enumerate(cases):
        x, w1, b1, w2, b2 = make_case(jax.random.fold_in(root, idx), B, D, S)
        params = fuse_cls_params(w1, b1, w2, b2)   # hoisted: once per weight set
        out = cls_apply(x, params)
        jax.block_until_ready(out)
        ref = _reference(x, w1, b1, w2, b2)
        assert out.shape == (B, S), (out.shape, (B, S))
        assert jnp.allclose(out, ref, atol=1e-5, rtol=1e-4), f"mismatch at {(B, D, S)}"

    print("KERNEL_OK")
</pallas_src>

<mosaic_0001>
module attributes {stable_mosaic.version = 11 : i64} {
  func.func @_cls_kernel_small_s(%arg0: i32, %arg1: memref<8x32xf32, #tpu.memory_space<vmem>>, %arg2: memref<128x32xf32, #tpu.memory_space<vmem>>, %arg3: memref<128x1xf32, #tpu.memory_space<vmem>>, %arg4: memref<16x8xf32, #tpu.memory_space<vmem>>) attributes {dimension_semantics = [#tpu.dimension_semantics<parallel>], iteration_bounds = array<i64: 1>, scalar_prefetch = 0 : i64, scratch_operands = 0 : i64, tpu.core_type = #tpu.core_type<tc>, window_params = [{transform_indices = @transform_0, window_bounds = array<i64: 8, 32>}, {pipeline_mode = #tpu.pipeline_mode<synchronous>, transform_indices = @transform_1, window_bounds = array<i64: 128, 32>}, {pipeline_mode = #tpu.pipeline_mode<synchronous>, transform_indices = @transform_2, window_bounds = array<i64: 128, 1>}, {transform_indices = @transform_3, window_bounds = array<i64: 16, 8>}]} {
    %c0 = arith.constant 0 : index
    %c0_0 = arith.constant 0 : index
    %0 = vector.load %arg2[%c0, %c0_0] : memref<128x32xf32, #tpu.memory_space<vmem>>, vector<128x32xf32>
    %c0_1 = arith.constant 0 : index
    %c0_2 = arith.constant 0 : index
    %1 = vector.load %arg1[%c0_1, %c0_2] : memref<8x32xf32, #tpu.memory_space<vmem>>, vector<8x32xf32>
    %cst = arith.constant dense<0.000000e+00> : vector<128x8xf32>
    %2 = tpu.matmul %0, %1, %cst {dimension_numbers = #tpu.dot_dimension_numbers<[1], [1], [0], [0], [0, 0, 1, 0], [], []>} : vector<128x32xf32>, vector<8x32xf32>, vector<128x8xf32> -> vector<128x8xf32>
    %c0_3 = arith.constant 0 : index
    %c0_4 = arith.constant 0 : index
    %3 = vector.load %arg3[%c0_3, %c0_4] : memref<128x1xf32, #tpu.memory_space<vmem>>, vector<128x1xf32>
    %4 = vector.broadcast %3 : vector<128x1xf32> to vector<128x8xf32>
    %5 = arith.addf %2, %4 : vector<128x8xf32>
    %cst_5 = arith.constant dense<0xFF800000> : vector<8xf32>
    %6 = vector.multi_reduction <maximumf>, %5, %cst_5 [0] : vector<128x8xf32> to vector<8xf32>
    %7 = vector.shape_cast %6 : vector<8xf32> to vector<1x8xf32>
    %8 = vector.broadcast %7 : vector<1x8xf32> to vector<128x8xf32>
    %9 = arith.subf %5, %8 : vector<128x8xf32>
    %10 = math.exp %9 : vector<128x8xf32>
    %cst_6 = arith.constant dense<0.000000e+00> : vector<8xf32>
    %11 = vector.multi_reduction <add>, %10, %cst_6 [0] : vector<128x8xf32> to vector<8xf32>
    %12 = vector.shape_cast %11 : vector<8xf32> to vector<1x8xf32>
    %13 = math.log %12 : vector<1x8xf32>
    %14 = vector.broadcast %13 : vector<1x8xf32> to vector<128x8xf32>
    %15 = arith.subf %9, %14 : vector<128x8xf32>
    %16 = vector.extract_strided_slice %15 {offsets = [0, 0], sizes = [16, 8], strides = [1, 1]} : vector<128x8xf32> to vector<16x8xf32>
    %c0_7 = arith.constant 0 : index
    %c0_8 = arith.constant 0 : index
    %17 = vector.load %arg4[%c0_7, %c0_8] : memref<16x8xf32, #tpu.memory_space<vmem>>, vector<16x8xf32>
    tpu.vector_store %arg4[%c0_7, %c0_8], %16 {strides = array<i32>} : memref<16x8xf32, #tpu.memory_space<vmem>>, vector<16x8xf32>,
    return
  }
  func.func @transform_0(%arg0: i32) -> (i32, i32) {
    %c0_i32 = arith.constant 0 : i32
    %c0_i32_0 = arith.constant 0 : i32
    return %arg0, %c0_i32 : i32, i32
  }
  func.func @transform_1(%arg0: i32) -> (i32, i32) {
    %c0_i32 = arith.constant 0 : i32
    %c0_i32_0 = arith.constant 0 : i32
    %c0_i32_1 = arith.constant 0 : i32
    return %c0_i32, %c0_i32_0 : i32, i32
  }
  func.func @transform_2(%arg0: i32) -> (i32, i32) {
    %c0_i32 = arith.constant 0 : i32
    %c0_i32_0 = arith.constant 0 : i32
    %c0_i32_1 = arith.constant 0 : i32
    return %c0_i32, %c0_i32_0 : i32, i32
  }
  func.func @transform_3(%arg0: i32) -> (i32, i32) {
    %c0_i32 = arith.constant 0 : i32
    %c0_i32_0 = arith.constant 0 : i32
    return %c0_i32, %arg0 : i32, i32
  }
}

</mosaic_0001>

<bundles_post_ra>
// kernel: tpu_custom_call.1
= control target key start
LH: loop header
LB: loop body
LE: loop exit
PB: predicated region body
PF: predicated region fallthrough
CT: control target
= control target key end

     0   :  { %vm127_vm0 = vcmask 261120   ;;  %v556_v3 = vmov 0   ;;  %vm324_vm1 = vcmask 64512   ;;  %s818_s0 = inlined_call_operand.vmem [shape: f32[8,32], index: 0, kind: input, shape index: {}]   ;;  %s819_s1 = inlined_call_operand.vmem [shape: f32[128,32], index: 1, kind: input, shape index: {}]   ;;  %s820_s2 = inlined_call_operand.vmem [shape: f32[128,1], index: 2, kind: input, shape index: {}]   ;;  %s821_s3 = inlined_call_operand.vmem [shape: f32[16,8], index: 3, kind: output, shape index: {}]  }
   0x1   :  { %v30_v0 = vld [vmem:[%s818_s0] sm:$0xff]  ;;  %521 = vset.pattern.permute.xlu1 %v556_v3  ;;  %520 = vset.pattern.permute.xlu0 %v556_v3  ;;  %v15_v4 = vld [vmem:[%s819_s1 + $0x8] sm:$0xff]  ;;  %v16_v6 = vld [vmem:[%s819_s1 + $0x10] sm:$0xff] }
   0x2   :  { %v14_v1 = vld [vmem:[%s819_s1] sm:$0xff]  ;;  %491 = vmatprep.subr.msk.mxu0 %vm127_vm0, %v30_v0  ;;  %517 = vmatprep.subr.msk.mxu1 %vm127_vm0, %v30_v0  ;;  %v23_v5 = vld [vmem:[%s819_s1 + $0x48] sm:$0xff]  ;;  %v24_v7 = vld [vmem:[%s819_s1 + $0x50] sm:$0xff] }
   0x3   :  { %v22_v2 = vld [vmem:[%s819_s1 + $0x40] sm:$0xff]  ;;  %492 = vmatpush3.xpose.msk.msra.mxu0 %vm127_vm0, %v30_v0  ;;  %518 = vmatpush3.xpose.msk.msra.mxu1 %vm127_vm0, %v30_v0  ;;  %v33_v8 = vld [vmem:[%s820_s2 + $0x10] sm:$0xff]  ;;  %v17_v9 = vld [vmem:[%s819_s1 + $0x18] sm:$0xff] }
   0x4   :  { %493 = vmatprep.mubr.msk.f32.mxu0 %vm127_vm0, %v14_v1  ;;  %505 = vmatprep.mubr.msk.f32.mxu1 %vm127_vm0, %v22_v2  ;;  %v25_v10 = vld [vmem:[%s819_s1 + $0x58] sm:$0xff]  ;;  %v31_v11 = vld [vmem:[%s820_s2] sm:$0xff]  ;;  %v32_v15 = vld [vmem:[%s820_s2 + $0x8] sm:$0xff] }
   0x5   :  { %v18_v12 = vld [vmem:[%s819_s1 + $0x20] sm:$0xff]  ;;  %59 = vperm.xlu1 %521, %v33_v8   ;;  %49 = vperm.xlu0 %520, %v31_v11   ;;  %v34_v14 = vld [vmem:[%s820_s2 + $0x18] sm:$0xff]  ;;  %v19_v16 = vld [vmem:[%s819_s1 + $0x28] sm:$0xff] }
   0x6   :  { %494 = vmatmul.mubr.msk.f32.vlgmr.msra.gmra.mrb[0].mxu0 %vm127_vm0, %v15_v4  ;;  %506 = vmatmul.mubr.msk.f32.vlgmr.msra.gmra.mrb[0].mxu1 %vm127_vm0, %v23_v5  ;;  %v26_v13 = vld [vmem:[%s819_s1 + $0x60] sm:$0xff]  ;;  %v27_v17 = vld [vmem:[%s819_s1 + $0x68] sm:$0xff]  ;;  %v20_v18 = vld [vmem:[%s819_s1 + $0x30] sm:$0xff] }
   0x7   :  { %496 = vmatprep.mubr.msk.f32.mxu0 %vm127_vm0, %v16_v6  ;;  %508 = vmatprep.mubr.msk.f32.mxu1 %vm127_vm0, %v24_v7  ;;  %v28_v19 = vld [vmem:[%s819_s1 + $0x70] sm:$0xff]  ;;  %v36_v20 = vld [vmem:[%s820_s2 + $0x28] sm:$0xff]  ;;  %v35_v21 = vld [vmem:[%s820_s2 + $0x20] sm:$0xff] }
   0x8   :  { %v21_v22 = vld [vmem:[%s819_s1 + $0x38] sm:$0xff]  ;;  %v37_v25 = vld [vmem:[%s820_s2 + $0x30] sm:$0xff]  ;;  %v40_v26 = vld [vmem:[%s820_s2 + $0x48] sm:$0xff] }
   0x9   :  { %64 = vperm.xlu1 %521, %v34_v14   ;;  %54 = vperm.xlu0 %520, %v32_v15   ;;  %v29_v23 = vld [vmem:[%s819_s1 + $0x78] sm:$0xff]  ;;  %v39_v27 = vld [vmem:[%s820_s2 + $0x40] sm:$0xff]  ;;  %v41_v29 = vld [vmem:[%s820_s2 + $0x50] sm:$0xff] }
   0xa   :  { %497 = vmatmul.mubr.msk.f32.gmra.mrb[2].mxu0 %vm127_vm0, %v17_v9  ;;  %509 = vmatmul.mubr.msk.f32.gmra.mrb[2].mxu1 %vm127_vm0, %v25_v10  ;;  %v38_v24 = vld [vmem:[%s820_s2 + $0x38] sm:$0xff]  ;;  %v44_v30 = vld [vmem:[%s820_s2 + $0x68] sm:$0xff]  ;;  %v43_v31 = vld [vmem:[%s820_s2 + $0x60] sm:$0xff] }
   0xb   :  { %499 = vmatprep.mubr.msk.f32.mxu0 %vm127_vm0, %v18_v12  ;;  %511 = vmatprep.mubr.msk.f32.mxu1 %vm127_vm0, %v26_v13  ;;  %v42_v28 = vld [vmem:[%s820_s2 + $0x58] sm:$0xff]  ;;  %v45_v33 = vld [vmem:[%s820_s2 + $0x70] sm:$0xff] }
   0xc   :  { %v46_v32 = vld [vmem:[%s820_s2 + $0x78] sm:$0xff] }
   0xd   :  { %74 = vperm.xlu1 %521, %v36_v20   ;;  %69 = vperm.xlu0 %520, %v35_v21  }
   0xe   :  { %500 = vmatmul.mubr.msk.f32.gmra.mrb[4].mxu0 %vm127_vm0, %v19_v16  ;;  %512 = vmatmul.mubr.msk.f32.gmra.mrb[4].mxu1 %vm127_vm0, %v27_v17 }
   0xf   :  { %502 = vmatprep.mubr.msk.f32.mxu0 %vm127_vm0, %v20_v18  ;;  %514 = vmatprep.mubr.msk.f32.mxu1 %vm127_vm0, %v28_v19 }
  0x11   :  { %84 = vperm.xlu1 %521, %v38_v24   ;;  %79 = vperm.xlu0 %520, %v37_v25  }
  0x12   :  { %503 = vmatmul.mubr.msk.f32.gmra.mrb[6].mxu0 %vm127_vm0, %v21_v22  ;;  %515 = vmatmul.mubr.msk.f32.gmra.mrb[6].mxu1 %vm127_vm0, %v29_v23 }
  0x15   :  { %94 = vperm.xlu1 %521, %v40_v26   ;;  %89 = vperm.xlu0 %520, %v39_v27  }
  0x19   :  { %104 = vperm.xlu1 %521, %v42_v28   ;;  %99 = vperm.xlu0 %520, %v41_v29  }
  0x1d   :  { %114 = vperm.xlu1 %521, %v44_v30   ;;  %109 = vperm.xlu0 %520, %v43_v31  }
  0x21   :  { %124 = vperm.xlu1 %521, %v46_v32   ;;  %119 = vperm.xlu0 %520, %v45_v33  }
  0x84   :  { %v60_v34 = vpop.permute.xlu1 %59  ;;  %v50_v35 = vpop.permute.xlu0 %49 }
  0x88   :  { %v65_v36 = vpop.permute.xlu1 %64  ;;  %v55_v37 = vpop.permute.xlu0 %54 }
  0x8c   :  { %v75_v38 = vpop.permute.xlu1 %74  ;;  %v70_v39 = vpop.permute.xlu0 %69 }
  0x90   :  { %v85_v40 = vpop.permute.xlu1 %84  ;;  %v80_v41 = vpop.permute.xlu0 %79 }
  0x94   :  { %v95_v42 = vpop.permute.xlu1 %94  ;;  %v90_v43 = vpop.permute.xlu0 %89 }
  0x98   :  { %v105_v44 = vpop.permute.xlu1 %104  ;;  %v100_v45 = vpop.permute.xlu0 %99 }
  0x9c   :  { %v115_v55 = vpop.permute.xlu1 %114  ;;  %v110_v56 = vpop.permute.xlu0 %109 }
  0xa0   :  { %v125_v22 = vpop.permute.xlu1 %124  ;;  %v120_v27 = vpop.permute.xlu0 %119 }
  0xd9   :  { %v495_v46 = vpop.f32.mrb[0].mxu0  ;;  %v507_v47 = vpop.f32.mrb[0].mxu1 }
  0xda   :  { %v245_v48 = vpop.f32.mrb[1].mxu0  ;;  %v285_v49 = vpop.f32.mrb[1].mxu1  ;;  %v696_v54 = vadd.f32 %v495_v46, %v55_v37  ;;  %v698_v57 = vadd.f32 %v507_v47, %v95_v42 }
  0xdb   :  { %v246_v58 = vadd.f32 %v245_v48, %v50_v35  ;;  %v700_v59 = vadd.f32 %v285_v49, %v90_v43 }
  0xdc   :  { %v326_v2 = vsel %vm324_vm1, %v696_v54, -inf  ;;  %v339_v6 = vsel %vm324_vm1, %v698_v57, -inf }
  0xdd   :  { %v498_v50 = vpop.f32.mrb[2].mxu0  ;;  %v510_v51 = vpop.f32.mrb[2].mxu1  ;;  %v325_v7 = vsel %vm324_vm1, %v246_v58, -inf  ;;  %v337_v10 = vsel %vm324_vm1, %v700_v59, -inf }
  0xde   :  { %v255_v52 = vpop.f32.mrb[3].mxu0  ;;  %v295_v53 = vpop.f32.mrb[3].mxu1  ;;  %v702_v62 = vadd.f32 %v498_v50, %v65_v36  ;;  %v723_v11 = vadd.f32 %v510_v51, %v105_v44 }
  0xdf   :  { %v708_v3 = vadd.f32 %v255_v52, %v60_v34  ;;  %v729_v17 = vadd.f32 %v295_v53, %v100_v45 }
  0xe0   :  { %v328_v16 = vsel %vm324_vm1, %v702_v62, -inf  ;;  %v343_v36 = vsel %vm324_vm1, %v723_v11, -inf }
  0xe1   :  { %v501_v60 = vpop.f32.mrb[4].mxu0  ;;  %v513_v61 = vpop.f32.mrb[4].mxu1  ;;  %v327_v23 = vsel %vm324_vm1, %v708_v3, -inf }
  0xe2   :  { %v704_v63 = vadd.f32 %v501_v60, %v75_v38  ;;  %v265_v0 = vpop.f32.mrb[5].mxu0  ;;  %v305_v1 = vpop.f32.mrb[5].mxu1  ;;  %v710_v4 = vadd.f32 %v513_v61, %v115_v55 }
  0xe3   :  { %v712_v5 = vadd.f32 %v265_v0, %v70_v39  ;;  %v719_v9 = vadd.f32 %v305_v1, %v110_v56  ;;  %v341_v39 = vsel %vm324_vm1, %v729_v17, -inf }
  0xe4   :  { %v331_v8 = vsel %vm324_vm1, %v704_v63, -inf  ;;  %v347_v25 = vsel %vm324_vm1, %v710_v4, -inf }
  0xe5   :  { %v332_v12 = vmax.f32 %v326_v2, %v331_v8  ;;  %v329_v13 = vsel %vm324_vm1, %v712_v5, -inf  ;;  %v504_v14 = vpop.f32.mrb[6].mxu0  ;;  %v516_v15 = vpop.f32.mrb[6].mxu1  ;;  %v345_v29 = vsel %vm324_vm1, %v719_v9, -inf }
  0xe6   :  { %v330_v18 = vmax.f32 %v325_v7, %v329_v13  ;;  %v731_v19 = vadd.f32 %v504_v14, %v85_v40  ;;  %v275_v20 = vpop.f32.mrb[7].mxu0  ;;  %v315_v21 = vpop.f32.mrb[7].mxu1  ;;  %v741_v31 = vadd.f32 %v516_v15, %v125_v22 }
  0xe7   :  { %v340_v24 = vmax.f32 %v332_v12, %v339_v6  ;;  %v276_v26 = vadd.f32 %v275_v20, %v80_v41  ;;  %v744_v35 = vadd.f32 %v315_v21, %v120_v27 }
  0xe8   :  { %v338_v28 = vmax.f32 %v330_v18, %v337_v10  ;;  %v335_v30 = vsel %vm324_vm1, %v731_v19, -inf  ;;  %v351_v42 = vsel %vm324_vm1, %v741_v31, -inf }
  0xe9   :  { %v348_v32 = vmax.f32 %v340_v24, %v347_v25  ;;  %v336_v33 = vmax.f32 %v328_v16, %v335_v30  ;;  %v333_v34 = vsel %vm324_vm1, %v276_v26, -inf  ;;  %v349_v45 = vsel %vm324_vm1, %v744_v35, -inf }
  0xea   :  { %v346_v37 = vmax.f32 %v338_v28, %v345_v29  ;;  %v334_v38 = vmax.f32 %v327_v23, %v333_v34 }
  0xeb   :  { %v344_v40 = vmax.f32 %v336_v33, %v343_v36 }
  0xec   :  { %v353_v41 = vmax.f32 %v346_v37, %v348_v32  ;;  %v342_v43 = vmax.f32 %v334_v38, %v341_v39 }
  0xed   :  { %v352_v44 = vmax.f32 %v344_v40, %v351_v42 }
  0xee   :  { %v350_v46 = vmax.f32 %v342_v43, %v349_v45 }
  0xf0   :  { %v354_v47 = vmax.f32 %v350_v46, %v352_v44 }
  0xf2   :  { %v355_v48 = vmax.f32 %v353_v41, %v354_v47 }
  0xf4   :  { %v356_v49 = vrot.slane %v355_v48, 4 }
  0xf6   :  { %v357_v50 = vmax.f32 %v355_v48, %v356_v49 }
  0xf8   :  { %v358_v51 = vrot.slane %v357_v50, 2 }
  0xfa   :  { %v359_v52 = vmax.f32 %v357_v50, %v358_v51 }
  0xfc   :  { %v360_v53 = vrot.slane %v359_v52, 1 }
  0xfe   :  { %v754_v55 = vmax.f32 %v359_v52, %v360_v53 }
 0x100   :  { %v757_v56 = vsub.f32 %v246_v58, %v754_v55  ;;  %v761_v60 = vsub.f32 %v696_v54, %v754_v55  ;;  %v364_v61 = vsub.f32 %v708_v3, %v754_v55  ;;  %v365_v0 = vsub.f32 %v702_v62, %v754_v55 }
 0x101   :  { %v366_v1 = vsub.f32 %v712_v5, %v754_v55  ;;  %v367_v2 = vsub.f32 %v704_v63, %v754_v55  ;;  %v368_v6 = vsub.f32 %v276_v26, %v754_v55  ;;  %v369_v58 = vsub.f32 %v731_v19, %v754_v55 }
 0x102   :  { %v370_v54 = vsub.f32 %v700_v59, %v754_v55  ;;  %v371_v3 = vsub.f32 %v698_v57, %v754_v55  ;;  %v372_v62 = vsub.f32 %v729_v17, %v754_v55  ;;  %v373_v5 = vsub.f32 %v723_v11, %v754_v55 }
 0x103   :  { %v374_v63 = vsub.f32 %v719_v9, %v754_v55  ;;  %v375_v7 = vsub.f32 %v710_v4, %v754_v55  ;;  %v376_v8 = vsub.f32 %v744_v35, %v754_v55  ;;  %v377_v59 = vsub.f32 %v741_v31, %v754_v55 }
 0x104   :  { %v378_v57 = vmul.f32 1.442695, %v757_v56  ;;  %v380_v10 = vmul.f32 1.442695, %v761_v60  ;;  %v382_v12 = vmul.f32 1.442695, %v364_v61 }
 0x105   :  { %v384_v13 = vmul.f32 1.442695, %v365_v0  ;;  %v386_v11 = vmul.f32 1.442695, %v366_v1  ;;  %v388_v9 = vmul.f32 1.442695, %v367_v2 }
 0x106   :  { %522 = vpow2.f32 %v378_v57  ;;  %v390_v4 = vmul.f32 1.442695, %v368_v6  ;;  %v392_v14 = vmul.f32 1.442695, %v369_v58  ;;  %v394_v15 = vmul.f32 1.442695, %v370_v54 }
 0x107   :  { %524 = vpow2.f32 %v380_v10  ;;  %v396_v18 = vmul.f32 1.442695, %v371_v3  ;;  %v398_v23 = vmul.f32 1.442695, %v372_v62  ;;  %v400_v27 = vmul.f32 1.442695, %v373_v5 }
 0x108   :  { %526 = vpow2.f32 %v382_v12  ;;  %v402_v31 = vmul.f32 1.442695, %v374_v63  ;;  %v404_v35 = vmul.f32 1.442695, %v375_v7  ;;  %v406_v39 = vmul.f32 1.442695, %v376_v8 }
 0x109   :  { %528 = vpow2.f32 %v384_v13  ;;  %v408_v43 = vmul.f32 1.442695, %v377_v59 }
 0x10a   :  { %530 = vpow2.f32 %v386_v11 }
 0x10b   :  { %532 = vpow2.f32 %v388_v9 }
 0x10c   :  { %534 = vpow2.f32 %v390_v4 }
 0x10d   :  { %536 = vpow2.f32 %v392_v14 }
 0x10e   :  { %538 = vpow2.f32 %v394_v15 }
 0x10f   :  { %540 = vpow2.f32 %v396_v18 }
 0x110   :  { %v523_v16 = vpop.eup %522  ;;  %542 = vpow2.f32 %v398_v23 }
 0x111   :  { %v525_v17 = vpop.eup %524  ;;  %v410_v19 = vsel %vm324_vm1, %v523_v16, 0.0  ;;  %544 = vpow2.f32 %v400_v27 }
 0x112   :  { %v527_v20 = vpop.eup %526  ;;  %v411_v21 = vsel %vm324_vm1, %v525_v17, 0.0  ;;  %546 = vpow2.f32 %v402_v31 }
 0x113   :  { %v529_v22 = vpop.eup %528  ;;  %v412_v24 = vadd.f32 %v411_v21, %v410_v19  ;;  %v413_v25 = vsel %vm324_vm1, %v527_v20, 0.0  ;;  %548 = vpow2.f32 %v404_v35 }
 0x114   :  { %v531_v26 = vpop.eup %530  ;;  %v415_v29 = vsel %vm324_vm1, %v529_v22, 0.0  ;;  %550 = vpow2.f32 %v406_v39 }
 0x115   :  { %v414_v28 = vadd.f32 %v413_v25, %v412_v24  ;;  %v533_v30 = vpop.eup %532  ;;  %v417_v33 = vsel %vm324_vm1, %v531_v26, 0.0  ;;  %552 = vpow2.f32 %v408_v43 }
 0x116   :  { %v535_v34 = vpop.eup %534  ;;  %v419_v37 = vsel %vm324_vm1, %v533_v30, 0.0 }
 0x117   :  { %v416_v32 = vadd.f32 %v415_v29, %v414_v28  ;;  %v537_v38 = vpop.eup %536  ;;  %v421_v41 = vsel %vm324_vm1, %v535_v34, 0.0 }
 0x118   :  { %v539_v42 = vpop.eup %538  ;;  %v423_v45 = vsel %vm324_vm1, %v537_v38, 0.0 }
 0x119   :  { %v418_v36 = vadd.f32 %v417_v33, %v416_v32  ;;  %v541_v46 = vpop.eup %540  ;;  %v425_v48 = vsel %vm324_vm1, %v539_v42, 0.0 }
 0x11a   :  { %v543_v49 = vpop.eup %542  ;;  %v427_v51 = vsel %vm324_vm1, %v541_v46, 0.0 }
 0x11b   :  { %v420_v40 = vadd.f32 %v419_v37, %v418_v36  ;;  %v545_v52 = vpop.eup %544  ;;  %v429_v55 = vsel %vm324_vm1, %v543_v49, 0.0 }
 0x11c   :  { %v547_v61 = vpop.eup %546  ;;  %v431_v1 = vsel %vm324_vm1, %v545_v52, 0.0 }
 0x11d   :  { %v422_v44 = vadd.f32 %v421_v41, %v420_v40  ;;  %v549_v2 = vpop.eup %548  ;;  %v433_v58 = vsel %vm324_vm1, %v547_v61, 0.0 }
 0x11e   :  { %v551_v54 = vpop.eup %550  ;;  %v435_v62 = vsel %vm324_vm1, %v549_v2, 0.0 }
 0x11f   :  { %v424_v47 = vadd.f32 %v423_v45, %v422_v44  ;;  %v553_v5 = vpop.eup %552  ;;  %v437_v7 = vsel %vm324_vm1, %v551_v54, 0.0 }
 0x120   :  { %v439_v59 = vsel %vm324_vm1, %v553_v5, 0.0 }
 0x121   :  { %v426_v50 = vadd.f32 %v425_v48, %v424_v47 }
 0x123   :  { %v428_v53 = vadd.f32 %v427_v51, %v426_v50 }
 0x125   :  { %v430_v0 = vadd.f32 %v429_v55, %v428_v53 }
 0x127   :  { %v432_v6 = vadd.f32 %v431_v1, %v430_v0 }
 0x129   :  { %v434_v3 = vadd.f32 %v433_v58, %v432_v6 }
 0x12b   :  { %v436_v63 = vadd.f32 %v435_v62, %v434_v3 }
 0x12d   :  { %v438_v8 = vadd.f32 %v437_v7, %v436_v63 }
 0x12f   :  { %v440_v57 = vadd.f32 %v439_v59, %v438_v8 }
 0x131   :  { %v441_v10 = vrot.slane %v440_v57, 4 }
 0x133   :  { %v442_v12 = vadd.f32 %v441_v10, %v440_v57 }
 0x135   :  { %v443_v13 = vrot.slane %v442_v12, 2 }
 0x137   :  { %v444_v11 = vadd.f32 %v443_v13, %v442_v12 }
 0x139   :  { %v445_v9 = vrot.slane %v444_v11, 1 }
 0x13b   :  { %v446_v4 = vadd.f32 %v445_v9, %v444_v11 }
 0x13d   :  { %554 = vlog2.f32 %v446_v4 }
 0x147   :  { %v555_v14 = vpop.eup %554 }
 0x148   :  { %v448_v15 = vmul.f32 0.6931472, %v555_v14 }
 0x14a   :  { %v449_v16 = vsub.f32 %v757_v56, %v448_v15  ;;  %v450_v17 = vsub.f32 %v761_v60, %v448_v15 }
 0x14c   :  { %451 = vst.msk [vmem:[%s821_s3] sm:$0xff] %vm324_vm1, %v449_v16  ;;  %452 = vst.msk [vmem:[%s821_s3 + $0x8] sm:$0xff] %vm324_vm1, %v450_v17 }

</bundles_post_ra>
